<compile_context>
chip_gen: v7x
topology: tpu7x:2x2x1
jax: 0.10.0
libtpu: 0.0.40
codegen_flags: <defaults>
</compile_context>

<pallas_src>
import jax
import jax.numpy as jnp
from jax.experimental import pallas as pl
from jax.experimental.pallas import tpu as pltpu


_LANE = 128     # lane width (last-dim tiling unit)
_SUBLANE = 8    # f32 sublane height (second-to-last-dim tiling unit)


def _make_mlp_kernel(num_hidden_layers, activation_fn):
    """Builds a kernel computing the full MLP forward for one batch tile."""
    if activation_fn == "Tanh":
        act = jnp.tanh
    elif activation_fn == "ReLU":
        act = lambda v: jnp.maximum(v, 0.0)
    else:
        raise ValueError(f"unsupported activation: {activation_fn}")

    def kernel(*refs):
        # refs = (x_ref, w0, b0, w1, b1, ..., w_last, o_ref)
        x_ref = refs[0]
        o_ref = refs[-1]
        param_refs = refs[1:-1]

        h = x_ref[...].astype(jnp.float32)
        for i in range(num_hidden_layers):
            w = param_refs[2 * i][...]                            # bf16 (or f32) MXU operand
            b = param_refs[2 * i + 1][...].astype(jnp.float32)    # (1, d) -> broadcasts; f32
            # MXU inputs in the weight dtype, f32 accumulation; bias-add / act in f32.
            y = jnp.dot(h.astype(w.dtype), w, preferred_element_type=jnp.float32) + b
            h = act(y)
        w_last = param_refs[-1][...]
        o_ref[...] = jnp.dot(h.astype(w_last.dtype), w_last,
                             preferred_element_type=jnp.float32).astype(o_ref.dtype)

    return kernel


def _pick_batch_tile(B):
    """MXU-sized tile that divides B; prefer >=2 grid steps (pipelining / v7x megacore)."""
    for cand in (512, 256, 128, 64, 32, 16, 8):
        if cand <= B // 2 and B % cand == 0:
            return cand
    for cand in (512, 256, 128, 64, 32, 16, 8):
        if B % cand == 0:
            return cand
    return B  # not 8-divisible: fall back to a full-array block (always legal)


def blnn_forward(x, weights, biases, last_weight, *, activation_fn="Tanh",
                 batch_tile=None, weight_dtype=jnp.bfloat16):
    """Pallas forward pass of BLNN.

    Args:
      x:           [B, d_in] float32
      weights:     list of hidden-layer weights, each already [d_in_i, d_out_i]
      biases:      list of hidden-layer biases, each [d_out_i]
      last_weight: [d_hidden_last, d_out] (no bias)
      weight_dtype: dtype fed to the MXU for the weights (bf16 default; f32 for exactness)
    """
    B, d_in = x.shape
    d_out = last_weight.shape[1]
    num_hidden = len(weights)

    if batch_tile is None:
        batch_tile = _pick_batch_tile(B)
    assert B % batch_tile == 0, "batch must be divisible by batch_tile"
    assert batch_tile % _SUBLANE == 0 or batch_tile == B, (
        "batch_tile must be a multiple of 8 (f32 sublane) or equal to the full batch")
    grid = (B // batch_tile,)

    # Lane-dense output: pad d_out up to a multiple of 128 so the epilogue store is an
    # unmasked vst; the zero columns are sliced off after the pallas_call.
    d_out_p = max(_LANE, ((d_out + _LANE - 1) // _LANE) * _LANE)
    last_w = jnp.pad(last_weight, ((0, 0), (0, d_out_p - d_out))).astype(weight_dtype)

    # Weights in the MXU dtype; biases stay f32 (bias-add / activation run in f32).
    w_cast = [w.astype(weight_dtype) for w in weights]
    b2d = [b.reshape(1, -1).astype(jnp.float32) for b in biases]

    # Interleave params in the order the kernel expects.
    params = []
    in_specs = [pl.BlockSpec((batch_tile, d_in), lambda i: (i, 0))]
    for w, b in zip(w_cast, b2d):
        params.append(w)
        in_specs.append(pl.BlockSpec(w.shape, lambda i: (0, 0)))
        params.append(b)
        in_specs.append(pl.BlockSpec(b.shape, lambda i: (0, 0)))
    params.append(last_w)
    in_specs.append(pl.BlockSpec(last_w.shape, lambda i: (0, 0)))

    # ---- Cost estimate (lets XLA schedule the wrapper-side casts/pads around the call).
    dims = [d_in] + [w.shape[1] for w in weights] + [d_out_p]
    flops = 2 * B * sum(a * b for a, b in zip(dims[:-1], dims[1:]))
    transcendentals = B * sum(w.shape[1] for w in weights) if activation_fn == "Tanh" else 0
    w_itemsize = jnp.dtype(weight_dtype).itemsize
    param_bytes = ((sum(int(w.size) for w in w_cast) + int(last_w.size)) * w_itemsize
                   + sum(int(b.size) for b in b2d) * 4)
    bytes_accessed = int(x.size) * 4 + B * d_out_p * 4 + param_bytes
    cost = pl.CostEstimate(flops=flops, transcendentals=transcendentals,
                           bytes_accessed=bytes_accessed)

    # ---- Explicit VMEM budget: double-buffered x/out tiles + resident (double-buffered)
    #      params + intermediate activations, with headroom. Floor 32 MiB, cap 64 MiB so it
    #      stays inside v7x's physical VMEM while still opening up v5e's 16 MiB default.
    max_feat = max(dims)
    vmem_needed = (2 * batch_tile * (d_in + d_out_p) * 4     # pipelined input/output tiles
                   + 2 * param_bytes                         # resident, double-buffered params
                   + 4 * batch_tile * max_feat * 4)          # intermediate activations
    vmem_limit = min(max(int(vmem_needed * 1.3), 32 * 1024 * 1024), 64 * 1024 * 1024)

    kernel = _make_mlp_kernel(num_hidden, activation_fn)

    out_padded = pl.pallas_call(
        kernel,
        out_shape=jax.ShapeDtypeStruct((B, d_out_p), jnp.float32),
        grid_spec=pltpu.PrefetchScalarGridSpec(
            num_scalar_prefetch=0,
            grid=grid,
            in_specs=in_specs,
            out_specs=pl.BlockSpec((batch_tile, d_out_p), lambda i: (i, 0)),
        ),
        compiler_params=pltpu.CompilerParams(
            dimension_semantics=("parallel",),   # batch axis shards across v7x TensorCores
            vmem_limit_bytes=vmem_limit,
        ),
        cost_estimate=cost,
    )(x, *params)

    return out_padded[:, :d_out]


def init_blnn_params(key, d_in, d_hidden, d_out):
    """Deterministic init matching BLNN.__init__ shapes.

    PyTorch stores Linear weights as [out, in] and initializes them orthogonally;
    here we generate orthogonal [out, in] matrices and return their transposes
    ([in, out]) so the kernel can do x @ W.
    """
    orth = jax.nn.initializers.orthogonal()
    dims = [d_in] + list(d_hidden)
    weights, biases = [], []
    for i in range(len(d_hidden)):
        key, wk = jax.random.split(key)
        w_torch = orth(wk, (dims[i + 1], dims[i]), jnp.float32)   # [out, in]
        weights.append(jnp.transpose(w_torch))                    # [in, out]
        # torch.nn.Linear default bias init: U(-1/sqrt(in), 1/sqrt(in))
        key, bk = jax.random.split(key)
        bound = 1.0 / jnp.sqrt(jnp.float32(dims[i]))
        biases.append(jax.random.uniform(bk, (dims[i + 1],), jnp.float32, -bound, bound))
    key, lk = jax.random.split(key)
    w_last_torch = orth(lk, (d_out, d_hidden[-1]), jnp.float32)   # [out, in], bias=None
    last_weight = jnp.transpose(w_last_torch)                     # [in, out]
    return weights, biases, last_weight


def _reference_forward(x, weights, biases, last_weight, activation_fn="Tanh"):
    act = jnp.tanh if activation_fn == "Tanh" else (lambda v: jnp.maximum(v, 0.0))
    h = x
    for w, b in zip(weights, biases):
        h = act(h @ w + b)
    return h @ last_weight


if __name__ == "__main__":
    # Small shapes consistent with the module: an MLP on [batch, d_in] inputs.
    # batch=256 gives a multi-step (2-step) pipelined / megacore-shardable grid.
    batch, d_in, d_hidden, d_out = 256, 4, [32, 32], 4
    activation_fn = "Tanh"

    key = jax.random.PRNGKey(0)
    key, xk = jax.random.split(key)
    x = jax.random.normal(xk, (batch, d_in), jnp.float32)

    weights, biases, last_weight = init_blnn_params(key, d_in, d_hidden, d_out)

    ref = _reference_forward(x, weights, biases, last_weight, activation_fn)

    # Exact-precision path (f32 MXU operands): bit-faithful vs the pure-JAX reference.
    out_f32 = jax.block_until_ready(
        blnn_forward(x, weights, biases, last_weight,
                     activation_fn=activation_fn, weight_dtype=jnp.float32))
    assert out_f32.shape == (batch, d_out)
    assert jnp.allclose(out_f32, ref, atol=1e-5, rtol=1e-5)

    # Default fast path (bf16 MXU operands, f32 accumulation & element-wise math).
    out_bf16 = jax.block_until_ready(
        blnn_forward(x, weights, biases, last_weight, activation_fn=activation_fn))
    assert out_bf16.shape == (batch, d_out)
    assert jnp.allclose(out_bf16, ref, atol=5e-2, rtol=5e-2)

    print("KERNEL_OK")
</pallas_src>

<mosaic_0001>
module attributes {stable_mosaic.version = 11 : i64} {
  func.func @kernel(%arg0: i32, %arg1: memref<128x4xf32, #tpu.memory_space<vmem>>, %arg2: memref<4x32xf32, #tpu.memory_space<vmem>>, %arg3: memref<1x32xf32, #tpu.memory_space<vmem>>, %arg4: memref<32x32xf32, #tpu.memory_space<vmem>>, %arg5: memref<1x32xf32, #tpu.memory_space<vmem>>, %arg6: memref<32x128xf32, #tpu.memory_space<vmem>>, %arg7: memref<128x128xf32, #tpu.memory_space<vmem>>) attributes {dimension_semantics = [#tpu.dimension_semantics<parallel>], iteration_bounds = array<i64: 2>, scalar_prefetch = 0 : i64, scratch_operands = 0 : i64, tpu.core_type = #tpu.core_type<tc>, window_params = [{transform_indices = @transform_0, window_bounds = array<i64: 128, 4>}, {pipeline_mode = #tpu.pipeline_mode<synchronous>, transform_indices = @transform_1, window_bounds = array<i64: 4, 32>}, {pipeline_mode = #tpu.pipeline_mode<synchronous>, transform_indices = @transform_2, window_bounds = array<i64: 1, 32>}, {pipeline_mode = #tpu.pipeline_mode<synchronous>, transform_indices = @transform_3, window_bounds = array<i64: 32, 32>}, {pipeline_mode = #tpu.pipeline_mode<synchronous>, transform_indices = @transform_4, window_bounds = array<i64: 1, 32>}, {pipeline_mode = #tpu.pipeline_mode<synchronous>, transform_indices = @transform_5, window_bounds = array<i64: 32, 128>}, {transform_indices = @transform_6, window_bounds = array<i64: 128, 128>}]} {
    %c0 = arith.constant 0 : index
    %c0_0 = arith.constant 0 : index
    %0 = vector.load %arg1[%c0, %c0_0] : memref<128x4xf32, #tpu.memory_space<vmem>>, vector<128x4xf32>
    %c0_1 = arith.constant 0 : index
    %c0_2 = arith.constant 0 : index
    %1 = vector.load %arg2[%c0_1, %c0_2] : memref<4x32xf32, #tpu.memory_space<vmem>>, vector<4x32xf32>
    %c0_3 = arith.constant 0 : index
    %c0_4 = arith.constant 0 : index
    %2 = vector.load %arg3[%c0_3, %c0_4] : memref<1x32xf32, #tpu.memory_space<vmem>>, vector<1x32xf32>
    %cst = arith.constant dense<0.000000e+00> : vector<128x32xf32>
    %3 = tpu.matmul %0, %1, %cst {dimension_numbers = #tpu.dot_dimension_numbers<[1], [0], [0], [1], [0, 0, 1, 1], [], []>} : vector<128x4xf32>, vector<4x32xf32>, vector<128x32xf32> -> vector<128x32xf32>
    %4 = vector.broadcast %2 : vector<1x32xf32> to vector<128x32xf32>
    %5 = arith.addf %3, %4 : vector<128x32xf32>
    %6 = math.tanh %5 : vector<128x32xf32>
    %c0_5 = arith.constant 0 : index
    %c0_6 = arith.constant 0 : index
    %7 = vector.load %arg4[%c0_5, %c0_6] : memref<32x32xf32, #tpu.memory_space<vmem>>, vector<32x32xf32>
    %c0_7 = arith.constant 0 : index
    %c0_8 = arith.constant 0 : index
    %8 = vector.load %arg5[%c0_7, %c0_8] : memref<1x32xf32, #tpu.memory_space<vmem>>, vector<1x32xf32>
    %cst_9 = arith.constant dense<0.000000e+00> : vector<128x32xf32>
    %9 = tpu.matmul %6, %7, %cst_9 {dimension_numbers = #tpu.dot_dimension_numbers<[1], [0], [0], [1], [0, 0, 1, 1], [], []>} : vector<128x32xf32>, vector<32x32xf32>, vector<128x32xf32> -> vector<128x32xf32>
    %10 = vector.broadcast %8 : vector<1x32xf32> to vector<128x32xf32>
    %11 = arith.addf %9, %10 : vector<128x32xf32>
    %12 = math.tanh %11 : vector<128x32xf32>
    %c0_10 = arith.constant 0 : index
    %c0_11 = arith.constant 0 : index
    %13 = vector.load %arg6[%c0_10, %c0_11] : memref<32x128xf32, #tpu.memory_space<vmem>>, vector<32x128xf32>
    %cst_12 = arith.constant dense<0.000000e+00> : vector<128x128xf32>
    %14 = tpu.matmul %12, %13, %cst_12 {dimension_numbers = #tpu.dot_dimension_numbers<[1], [0], [0], [1], [0, 0, 1, 1], [], []>} : vector<128x32xf32>, vector<32x128xf32>, vector<128x128xf32> -> vector<128x128xf32>
    %c0_13 = arith.constant 0 : index
    %c0_14 = arith.constant 0 : index
    %15 = vector.load %arg7[%c0_13, %c0_14] : memref<128x128xf32, #tpu.memory_space<vmem>>, vector<128x128xf32>
    tpu.vector_store %arg7[%c0_13, %c0_14], %14 {strides = array<i32>} : memref<128x128xf32, #tpu.memory_space<vmem>>, vector<128x128xf32>,
    return
  }
  func.func @transform_0(%arg0: i32) -> (i32, i32) {
    %c0_i32 = arith.constant 0 : i32
    %c0_i32_0 = arith.constant 0 : i32
    return %arg0, %c0_i32 : i32, i32
  }
  func.func @transform_1(%arg0: i32) -> (i32, i32) {
    %c0_i32 = arith.constant 0 : i32
    %c0_i32_0 = arith.constant 0 : i32
    %c0_i32_1 = arith.constant 0 : i32
    return %c0_i32, %c0_i32_0 : i32, i32
  }
  func.func @transform_2(%arg0: i32) -> (i32, i32) {
    %c0_i32 = arith.constant 0 : i32
    %c0_i32_0 = arith.constant 0 : i32
    %c0_i32_1 = arith.constant 0 : i32
    return %c0_i32, %c0_i32_0 : i32, i32
  }
  func.func @transform_3(%arg0: i32) -> (i32, i32) {
    %c0_i32 = arith.constant 0 : i32
    %c0_i32_0 = arith.constant 0 : i32
    %c0_i32_1 = arith.constant 0 : i32
    return %c0_i32, %c0_i32_0 : i32, i32
  }
  func.func @transform_4(%arg0: i32) -> (i32, i32) {
    %c0_i32 = arith.constant 0 : i32
    %c0_i32_0 = arith.constant 0 : i32
    %c0_i32_1 = arith.constant 0 : i32
    return %c0_i32, %c0_i32_0 : i32, i32
  }
  func.func @transform_5(%arg0: i32) -> (i32, i32) {
    %c0_i32 = arith.constant 0 : i32
    %c0_i32_0 = arith.constant 0 : i32
    %c0_i32_1 = arith.constant 0 : i32
    return %c0_i32, %c0_i32_0 : i32, i32
  }
  func.func @transform_6(%arg0: i32) -> (i32, i32) {
    %c0_i32 = arith.constant 0 : i32
    %c0_i32_0 = arith.constant 0 : i32
    return %arg0, %c0_i32 : i32, i32
  }
}

</mosaic_0001>

<bundles_post_ra>
// kernel: tpu_custom_call.1
= control target key start
LH: loop header
LB: loop body
LE: loop exit
PB: predicated region body
PF: predicated region fallthrough
CT: control target
= control target key end

     0   :  { %11 = vsyncpa [#allocation3], 0  ;;  %s1697_s0 = inlined_call_operand.vmem [shape: f32[256,4], index: 0, kind: input, shape index: {}]   ;;  %s1698_s1 = inlined_call_operand.vmem [shape: f32[4,32], index: 1, kind: input, shape index: {}]   ;;  %s1699_s2 = inlined_call_operand.vmem [shape: f32[1,32], index: 2, kind: input, shape index: {}]   ;;  %s1700_s3 = inlined_call_operand.vmem [shape: f32[32,32], index: 3, kind: input, shape index: {}]   ;;  %s1701_s4 = inlined_call_operand.vmem [shape: f32[1,32], index: 4, kind: input, shape index: {}]   ;;  %s1702_s5 = inlined_call_operand.vmem [shape: f32[32,128], index: 5, kind: input, shape index: {}]   ;;  %s1703_s6 = inlined_call_operand.hbm [shape: f32[256,128], index: 6, kind: output, shape index: {}]  }
   0x1   :  { %13 = vsyncpa [#allocation3 + $0x1], 0  ;;  %s1437_s21 = smov 0   ;;  %s1439_s22 = smov 0  }
   0x2   :  { %s1441_s23 = smov 0   ;;  %s1443_s24 = smov 0  }
   0x3 LB: > { %s1458_s25 = sadd.s32 4294967295, %s1397_s24   ;;  %s1001_s26 = sadd.s32 4294967294, %s1397_s24   ;;  %s1397_s24 = sphi %s1443_s24, %s1709_s24   ;;  %s1393_s23 = sphi %s1441_s23, %s1708_s23   ;;  %s1389_s22 = sphi %s1439_s22, %s1707_s22   ;;  %s1385_s21 = sphi %s1437_s21, %s1706_s21  }
   0x4   : > { %s1462_s27 = sadd.s32 1, %s1397_s24   ;;  %s157_s28 = sadd.s32 1, %s1393_s23 }
   0x5   : > { %s154_s29 = ssub.s32 %s1397_s24, %s1462_s27  ;;  %p167_p0 = scmp.ne.s32.totalorder %s1393_s23, %s1389_s22 }
   0x6   : > { %p155_p1 = scmp.eq.s32.totalorder %s154_s29, 0  ;;  %p168_p2 = scmp.eq.s32.totalorder %s1458_s25, 1 }
   0x7   : > { %p173_p3 = scmp.ne.s32.totalorder %s1389_s22, %s1385_s21  ;;  %p174_p4 = scmp.eq.s32.totalorder %s1001_s26, 1 }
   0x8   : > { %s1473_s30 = scalar_select %p155_p1, %s1393_s23, %s157_s28  }
   0x9   : > { %p1475_p5 = por %p168_p2, %p167_p0  ;;  %p1479_p6 = por %p174_p4, %p173_p3 }
   0xa   : > { %p1004_p7 = scmp.ge.s32.totalorder %s1397_s24, 1  ;;  %p216_p8 = scmp.lt.s32.totalorder %s1397_s24, 3 }
   0xc   : > { %p217_p9 = pnand %p1004_p7, %p216_p8 }
   0xd   : > { %v269_v0 = vld [vmem:[%s1698_s1] sm:$0xf] (!%p217_p9)  ;;  %vm326_vm0 = vcmask (!%p217_p9), 1043456   ;;  %s1006_s11 = sshll.u32 (!%p217_p9), %s1458_s25, 4  ;;  %v492_v2 = vld [vmem:[%s1700_s3 + $0x8] sm:$0xff] (!%p217_p9)  ;;  %vm277_vm1 = vcmask (!%p217_p9), 31744  }
   0xe   : > { %220 = sbr.rel (%p217_p9) target bundleno = 736 (0x2e0), region = 44  ;;  %v491_v1 = vld [vmem:[%s1700_s3] sm:$0xff] (!%p217_p9)  ;;  %1122 = vmatprep.subr.msk.mxu0 (!%p217_p9), %vm326_vm0, %v269_v0  ;;  %p247_p10 = scmp.lt.s32.totalorder (!%p217_p9), %s1006_s11, 31  ;;  %1228 = vmatprep.subr.msk.mxu1 (!%p217_p9), %vm326_vm0, %v269_v0  ;;  %v493_v20 = vld [vmem:[%s1700_s3 + $0x10] sm:$0xff] (!%p217_p9)  ;;  %v494_v21 = vld [vmem:[%s1700_s3 + $0x18] sm:$0xff] (!%p217_p9)  ;;  %vm502_vm2 = vcmask (!%p217_p9), 261120  }
   0xf   : > { %1123 = vmatpush3.msk.msra.mxu0 (!%p217_p9), %vm326_vm0, %v269_v0  ;;  %1229 = vmatpush3.msk.msra.mxu1 (!%p217_p9), %vm326_vm0, %v269_v0  ;;  %v1212_v3 = vpack.c.bf16 (!%p217_p9), %v492_v2, %v491_v1  ;;  %v1216_v22 = vpack.c.bf16 (!%p217_p9), %v494_v21, %v493_v20  ;;  %v712_v23 = vld [vmem:[%s1702_s5] sm:$0xff] (!%p217_p9)  ;;  %v713_v24 = vld [vmem:[%s1702_s5 + $0x8] sm:$0xff] (!%p217_p9)  ;;  %s243_s26 = sand.u32 (!%p217_p9), 1, %s1389_s22   ;;  %s1064_s9 = sshll.u32 (!%p217_p9), %s1458_s25, 11 }
  0x10   : > { %v1220_v25 = vpack.c.bf16 (!%p217_p9), %v713_v24, %v712_v23  ;;  %v1547_v26 = vld [vmem:[%s1699_s2] ss:$0 sm:$0xff] (!%p217_p9)  ;;  %s1005_s28 = sshll.u32 (!%p217_p9), %s243_s26, 7  ;;  %s1648_s13 = scalar_lea.hbm (!%p217_p9), %s1703_s6, %s1064_s9 }
  0x11   : > { %1213 = vmatprep.subr.bf16.mxu1 (!%p217_p9), %v1212_v3  ;;  %s1627_s29 = scalar_lea.vmem (!%p217_p9), [#allocation2], %s1005_s28  ;;  %s1656_s25 = scalar_lea.sflag (!%p217_p9), [#allocation3], %s243_s26 }
  0x12   : > { %1221 = vmatprep.subr.bf16.mxu0 (!%p217_p9), %v1220_v25  ;;  %s939_s10 = sshll.u32 (!%p217_p9), %s1627_s29, 4  ;;  %s1399_s15 = smov (!%p217_p9), [#allocation2]   ;;  %s1650_s10 = int_to_ptr.vmem [resolvable:$true] %s939_s10 }
  0x13   : > { %s1335_s14 = scalar_lea.vmem (!%p217_p9), %s1650_s10, 2048 }
  0x14   : > { %p1336_p11 = scmp.ne.s32.totalorder (!%p217_p9), %s1650_s10, %s1335_s14 }
  0x15   : > { %s1711_s11 = smov (!%p247_p10, %s1006_s11), 31 }
  0x16   : > { %s1007_s16 = sshll.u32 %s1711_s11, 3  ;;  %p1337_p12 = pnand %p1336_p11, %p1475_p5 }
  0x17   : > { %s1498_s19 = scalar_lea.vmem %s1697_s0, %s1007_s16  ;;  %s1339_s16 = sshll.u32 %s1399_s15, 4  ;;  %s1340_s16 = int_to_ptr.vmem [resolvable:$false] %s1339_s16 }
  0x18   : > { %v253_v4 = vld [vmem:[%s1498_s19] sm:$0xff]  ;;  %v254_v5 = vld [vmem:[%s1498_s19 + $0x8] sm:$0xff]  ;;  %v255_v6 = vld [vmem:[%s1498_s19 + $0x10] sm:$0xff]  ;;  %p1338_p13 = pneg %p1337_p12  ;;  %s1341_s17 = scalar_lea.vmem %s1340_s16, 4096 }
  0x19   : > { %1124 = vmatprep.mubr.msk.f32.mxu0 %vm277_vm1, %v253_v4  ;;  %v261_v7 = vld [vmem:[%s1498_s19 + $0x40] sm:$0xff]  ;;  %v256_v8 = vld [vmem:[%s1498_s19 + $0x18] sm:$0xff]  ;;  %v262_v9 = vld [vmem:[%s1498_s19 + $0x48] sm:$0xff]  ;;  %p1342_p0 = scmp.lt.s32.totalorder %s1650_s10, %s1340_s16  ;;  %p1343_p1 = scmp.lt.s32.totalorder %s1341_s17, %s1335_s14 }
  0x1a   : > { %1125 = vmatmul.mubr.msk.f32.vlgmr.msra.gmra.mrb[0].mxu0 %vm277_vm1, %v254_v5  ;;  %1136 = vmatprep.mubr.msk.f32.mxu1 %vm277_vm1, %v261_v7  ;;  %v263_v10 = vld [vmem:[%s1498_s19 + $0x50] sm:$0xff]  ;;  %v257_v11 = vld [vmem:[%s1498_s19 + $0x20] sm:$0xff]  ;;  %v264_v12 = vld [vmem:[%s1498_s19 + $0x58] sm:$0xff] }
  0x1b   : > { %1127 = vmatprep.mubr.msk.f32.mxu0 %vm277_vm1, %v255_v6  ;;  %1137 = vmatmul.mubr.msk.f32.vlgmr.msra.gmra.mrb[0].mxu1 %vm277_vm1, %v262_v9  ;;  %v265_v13 = vld [vmem:[%s1498_s19 + $0x60] sm:$0xff]  ;;  %v258_v14 = vld [vmem:[%s1498_s19 + $0x28] sm:$0xff]  ;;  %v259_v15 = vld [vmem:[%s1498_s19 + $0x30] sm:$0xff]  ;;  %p1344_p2 = por %p1343_p1, %p1342_p0 }
  0x1c   : > { %1139 = vmatprep.mubr.msk.f32.mxu1 %vm277_vm1, %v263_v10  ;;  %1215 = vmatpush3.bf16.msra.mxu1 %v1212_v3  ;;  %v266_v16 = vld [vmem:[%s1498_s19 + $0x68] sm:$0xff]  ;;  %v267_v17 = vld [vmem:[%s1498_s19 + $0x70] sm:$0xff]  ;;  %v260_v18 = vld [vmem:[%s1498_s19 + $0x38] sm:$0xff] }
  0x1d   : > { %v268_v19 = vld [vmem:[%s1498_s19 + $0x78] sm:$0xff]  ;;  %1217 = vmatprep.subr.bf16.mxu1 %v1216_v22  ;;  %1223 = vmatpush3.bf16.msra.mxu0 %v1220_v25  ;;  %p1345_p3 = pnand %p1344_p2, %p1338_p13 }
  0x1e   : > { %1128 = vmatmul.mubr.msk.f32.gmra.mrb[2].mxu0 %vm277_vm1, %v256_v8 }
  0x1f   : > { %1130 = vmatprep.mubr.msk.f32.mxu0 %vm277_vm1, %v257_v11  ;;  %1140 = vmatmul.mubr.msk.f32.gmra.mrb[2].mxu1 %vm277_vm1, %v264_v12  ;;  %v714_v11 = vld [vmem:[%s1702_s5 + $0x10] sm:$0xff]  ;;  %v715_v12 = vld [vmem:[%s1702_s5 + $0x18] sm:$0xff] }
  0x20   : > { %1142 = vmatprep.mubr.msk.f32.mxu1 %vm277_vm1, %v265_v13  ;;  %1219 = vmatpush3.bf16.msra.mxu1 %v1216_v22  ;;  %v1224_v13 = vpack.c.bf16 %v715_v12, %v714_v11 }
  0x22   : > { %1131 = vmatmul.mubr.msk.f32.gmra.mrb[4].mxu0 %vm277_vm1, %v258_v14  ;;  %1225 = vmatprep.subr.bf16.mxu0 %v1224_v13  ;;  %v1590_v14 = vld [vmem:[%s1701_s4] ss:$0 sm:$0xff] }
  0x23   : > { %1133 = vmatprep.mubr.msk.f32.mxu0 %vm277_vm1, %v259_v15  ;;  %1143 = vmatmul.mubr.msk.f32.gmra.mrb[4].mxu1 %vm277_vm1, %v266_v16 }
  0x24   : > { %1145 = vmatprep.mubr.msk.f32.mxu1 %vm277_vm1, %v267_v17  ;;  %1227 = vmatpush3.bf16.msra.mxu0 %v1224_v13 }
  0x26   : > { %1134 = vmatmul.mubr.msk.f32.gmra.mrb[6].mxu0 %vm277_vm1, %v260_v18 }
  0x27   : > { %1146 = vmatmul.mubr.msk.f32.gmra.mrb[6].mxu1 %vm277_vm1, %v268_v19 }
  0xed   : > { %v1126_v27 = vpop.f32.mrb[0].mxu0 }
  0xee   : > { %v402_v28 = vadd.f32 %v1126_v27, %v1547_v26  ;;  %v396_v29 = vpop.f32.mrb[1].mxu0  ;;  %v1138_v31 = vpop.f32.mrb[0].mxu1 }
  0xef   : > { %v397_v30 = vadd.f32 %v1547_v26, %v396_v29  ;;  %v436_v32 = vpop.f32.mrb[1].mxu1  ;;  %v442_v55 = vadd.f32 %v1138_v31, %v1547_v26 }
  0xf0   : > { %v437_v44 = vadd.f32 %v1547_v26, %v436_v32 }
  0xf1   : > { %1271 = vtanh.f32 %v397_v30  ;;  %v1129_v33 = vpop.f32.mrb[2].mxu0 }
  0xf2   : > { %1273 = vtanh.f32 %v402_v28  ;;  %v412_v34 = vadd.f32 %v1129_v33, %v1547_v26  ;;  %v406_v35 = vpop.f32.mrb[3].mxu0  ;;  %v1141_v37 = vpop.f32.mrb[2].mxu1 }
  0xf3   : > { %v407_v36 = vadd.f32 %v1547_v26, %v406_v35  ;;  %v446_v38 = vpop.f32.mrb[3].mxu1  ;;  %v452_v59 = vadd.f32 %v1141_v37, %v1547_v26 }
  0xf4   : > { %v447_v54 = vadd.f32 %v1547_v26, %v446_v38 }
  0xf5   : > { %1275 = vtanh.f32 %v407_v36  ;;  %v1132_v39 = vpop.f32.mrb[4].mxu0 }
  0xf6   : > { %1277 = vtanh.f32 %v412_v34  ;;  %v422_v40 = vadd.f32 %v1132_v39, %v1547_v26  ;;  %v416_v41 = vpop.f32.mrb[5].mxu0  ;;  %v1144_v43 = vpop.f32.mrb[4].mxu1 }
  0xf7   : > { %v417_v42 = vadd.f32 %v1547_v26, %v416_v41  ;;  %v456_v45 = vpop.f32.mrb[5].mxu1  ;;  %v462_v0 = vadd.f32 %v1144_v43, %v1547_v26 }
  0xf8   : > { %v457_v58 = vadd.f32 %v1547_v26, %v456_v45 }
  0xf9   : > { %1279 = vtanh.f32 %v417_v42  ;;  %v1135_v46 = vpop.f32.mrb[6].mxu0 }
  0xfa   : > { %1281 = vtanh.f32 %v422_v40  ;;  %v432_v47 = vadd.f32 %v1135_v46, %v1547_v26  ;;  %v426_v48 = vpop.f32.mrb[7].mxu0  ;;  %v1147_v51 = vpop.f32.mrb[6].mxu1 }
  0xfb   : > { %v1272_v49 = vpop.eup %1271  ;;  %v427_v50 = vadd.f32 %v1547_v26, %v426_v48  ;;  %1283 = vtanh.f32 %v437_v44  ;;  %v466_v53 = vpop.f32.mrb[7].mxu1  ;;  %v472_v3 = vadd.f32 %v1147_v51, %v1547_v26 }
  0xfc   : > { %v1274_v52 = vpop.eup %1273  ;;  %1156 = vmatprep.mubr.msk.f32.mxu1 %vm502_vm2, %v1272_v49  ;;  %v467_v62 = vadd.f32 %v1547_v26, %v466_v53 }
  0xfd   : > { %1285 = vtanh.f32 %v427_v50  ;;  %1157 = vmatmul.mubr.msk.f32.vlgmr.msra.gmra.mrb[8].mxu1 %vm502_vm2, %v1274_v52 }
  0xfe   : > { %1287 = vtanh.f32 %v432_v47 }
  0xff   : > { %v1276_v56 = vpop.eup %1275  ;;  %1289 = vtanh.f32 %v447_v54 }
 0x100   : > { %v1278_v57 = vpop.eup %1277  ;;  %1159 = vmatprep.mubr.msk.f32.mxu1 %vm502_vm2, %v1276_v56  ;;  %1291 = vtanh.f32 %v442_v55 }
 0x101   : > { %1160 = vmatmul.mubr.msk.f32.gmra.mrb[10].mxu1 %vm502_vm2, %v1278_v57  ;;  %1293 = vtanh.f32 %v457_v58 }
 0x102   : > { %1295 = vtanh.f32 %v452_v59 }
 0x103   : > { %v1280_v60 = vpop.eup %1279  ;;  %1297 = vtanh.f32 %v467_v62 }
 0x104   : > { %v1282_v61 = vpop.eup %1281  ;;  %1162 = vmatprep.mubr.msk.f32.mxu1 %vm502_vm2, %v1280_v60  ;;  %1299 = vtanh.f32 %v462_v0 }
 0x105   : > { %1163 = vmatmul.mubr.msk.f32.gmra.mrb[12].mxu1 %vm502_vm2, %v1282_v61  ;;  %v1284_v63 = vpop.eup %1283  ;;  %1301 = vtanh.f32 %v472_v3 }
 0x107   : > { %v1286_v1 = vpop.eup %1285 }
 0x108   : > { %v1288_v2 = vpop.eup %1287  ;;  %1165 = vmatprep.mubr.msk.f32.mxu1 %vm502_vm2, %v1286_v1 }
 0x109   : > { %1166 = vmatmul.mubr.msk.f32.gmra.mrb[14].mxu1 %vm502_vm2, %v1288_v2  ;;  %v1290_v4 = vpop.eup %1289 }
 0x10a   : > { %1168 = vmatprep.mubr.msk.f32.mxu1 %vm502_vm2, %v1284_v63  ;;  %v1292_v5 = vpop.eup %1291 }
 0x10b   : > { %v1294_v6 = vpop.eup %1293 }
 0x10c   : > { %v1296_v7 = vpop.eup %1295 }
 0x10d   : > { %1169 = vmatmul.mubr.msk.f32.gmra.mrb[16].mxu1 %vm502_vm2, %v1292_v5  ;;  %v1298_v8 = vpop.eup %1297 }
 0x10e   : > { %1171 = vmatprep.mubr.msk.f32.mxu1 %vm502_vm2, %v1290_v4  ;;  %v1300_v9 = vpop.eup %1299 }
 0x10f   : > { %v1302_v10 = vpop.eup %1301 }
 0x111   : > { %1172 = vmatmul.mubr.msk.f32.gmra.mrb[18].mxu1 %vm502_vm2, %v1296_v7 }
 0x112   : > { %1174 = vmatprep.mubr.msk.f32.mxu1 %vm502_vm2, %v1294_v6 }
 0x115   : > { %1175 = vmatmul.mubr.msk.f32.gmra.mrb[20].mxu1 %vm502_vm2, %v1300_v9 }
 0x116   : > { %1177 = vmatprep.mubr.msk.f32.mxu1 %vm502_vm2, %v1298_v8 }
 0x119   : > { %1178 = vmatmul.mubr.msk.f32.gmra.mrb[22].mxu1 %vm502_vm2, %v1302_v10 }
 0x1d0   : > { %v1158_v15 = vpop.f32.mrb[8].mxu1 }
 0x1d1   : > { %v623_v16 = vadd.f32 %v1158_v15, %v1590_v14  ;;  %v617_v17 = vpop.f32.mrb[9].mxu1 }
 0x1d2   : > { %v618_v18 = vadd.f32 %v1590_v14, %v617_v17 }
 0x1d4   : > { %1303 = vtanh.f32 %v618_v18  ;;  %v1161_v19 = vpop.f32.mrb[10].mxu1 }
 0x1d5   : > { %1305 = vtanh.f32 %v623_v16  ;;  %v633_v20 = vadd.f32 %v1161_v19, %v1590_v14  ;;  %v627_v21 = vpop.f32.mrb[11].mxu1 }
 0x1d6   : > { %v628_v22 = vadd.f32 %v1590_v14, %v627_v21 }
 0x1d8   : > { %1307 = vtanh.f32 %v628_v22  ;;  %v1164_v23 = vpop.f32.mrb[12].mxu1 }
 0x1d9   : > { %1309 = vtanh.f32 %v633_v20  ;;  %v643_v24 = vadd.f32 %v1164_v23, %v1590_v14  ;;  %v637_v25 = vpop.f32.mrb[13].mxu1 }
 0x1da   : > { %v638_v26 = vadd.f32 %v1590_v14, %v637_v25 }
 0x1dc   : > { %1311 = vtanh.f32 %v638_v26  ;;  %v1167_v27 = vpop.f32.mrb[14].mxu1 }
 0x1dd   : > { %1313 = vtanh.f32 %v643_v24  ;;  %v653_v28 = vadd.f32 %v1167_v27, %v1590_v14  ;;  %v647_v29 = vpop.f32.mrb[15].mxu1 }
 0x1de   : > { %v1304_v30 = vpop.eup %1303  ;;  %v648_v31 = vadd.f32 %v1590_v14, %v647_v29 }
 0x1df   : > { %v1306_v32 = vpop.eup %1305  ;;  %1188 = vmatprep.mubr.msk.f32.mxu0 %vm502_vm2, %v1304_v30 }
 0x1e0   : > { %1315 = vtanh.f32 %v648_v31  ;;  %v1170_v33 = vpop.f32.mrb[16].mxu1  ;;  %1189 = vmatmul.mubr.msk.f32.vlgmr.msra.gmra.mrb[8].mxu0 %vm502_vm2, %v1306_v32 }
 0x1e1   : > { %1317 = vtanh.f32 %v653_v28  ;;  %v663_v34 = vadd.f32 %v1170_v33, %v1590_v14  ;;  %v657_v35 = vpop.f32.mrb[17].mxu1 }
 0x1e2   : > { %v1308_v36 = vpop.eup %1307  ;;  %v658_v37 = vadd.f32 %v1590_v14, %v657_v35 }
 0x1e3   : > { %v1310_v38 = vpop.eup %1309  ;;  %1191 = vmatprep.mubr.msk.f32.mxu0 %vm502_vm2, %v1308_v36 }
 0x1e4   : > { %1319 = vtanh.f32 %v658_v37  ;;  %v1173_v39 = vpop.f32.mrb[18].mxu1  ;;  %1192 = vmatmul.mubr.msk.f32.gmra.mrb[10].mxu0 %vm502_vm2, %v1310_v38 }
 0x1e5   : > { %1321 = vtanh.f32 %v663_v34  ;;  %v673_v40 = vadd.f32 %v1173_v39, %v1590_v14  ;;  %v667_v41 = vpop.f32.mrb[19].mxu1 }
 0x1e6   : > { %v1312_v42 = vpop.eup %1311  ;;  %v668_v43 = vadd.f32 %v1590_v14, %v667_v41 }
 0x1e7   : > { %v1314_v44 = vpop.eup %1313  ;;  %1194 = vmatprep.mubr.msk.f32.mxu0 %vm502_vm2, %v1312_v42 }
 0x1e8   : > { %1323 = vtanh.f32 %v668_v43  ;;  %v1176_v45 = vpop.f32.mrb[20].mxu1  ;;  %1195 = vmatmul.mubr.msk.f32.gmra.mrb[12].mxu0 %vm502_vm2, %v1314_v44 }
 0x1e9   : > { %1325 = vtanh.f32 %v673_v40  ;;  %v683_v46 = vadd.f32 %v1176_v45, %v1590_v14  ;;  %v677_v47 = vpop.f32.mrb[21].mxu1 }
 0x1ea   : > { %v1316_v48 = vpop.eup %1315  ;;  %v678_v49 = vadd.f32 %v1590_v14, %v677_v47 }
 0x1eb   : > { %v1318_v50 = vpop.eup %1317  ;;  %1197 = vmatprep.mubr.msk.f32.mxu0 %vm502_vm2, %v1316_v48 }
 0x1ec   : > { %1327 = vtanh.f32 %v678_v49  ;;  %v1179_v51 = vpop.f32.mrb[22].mxu1  ;;  %1198 = vmatmul.mubr.msk.f32.gmra.mrb[14].mxu0 %vm502_vm2, %v1318_v50 }
 0x1ed   : > { %1329 = vtanh.f32 %v683_v46  ;;  %v693_v52 = vadd.f32 %v1179_v51, %v1590_v14  ;;  %v687_v53 = vpop.f32.mrb[23].mxu1 }
 0x1ee   : > { %v1320_v54 = vpop.eup %1319  ;;  %v688_v55 = vadd.f32 %v1590_v14, %v687_v53 }
 0x1ef   : > { %v1322_v56 = vpop.eup %1321  ;;  %1200 = vmatprep.mubr.msk.f32.mxu0 %vm502_vm2, %v1320_v54 }
 0x1f0   : > { %1331 = vtanh.f32 %v688_v55  ;;  %1201 = vmatmul.mubr.msk.f32.gmra.mrb[16].mxu0 %vm502_vm2, %v1322_v56 }
 0x1f1   : > { %1333 = vtanh.f32 %v693_v52 }
 0x1f2   : > { %v1324_v57 = vpop.eup %1323 }
 0x1f3   : > { %v1326_v58 = vpop.eup %1325  ;;  %1203 = vmatprep.mubr.msk.f32.mxu0 %vm502_vm2, %v1324_v57 }
 0x1f4   : > { %1204 = vmatmul.mubr.msk.f32.gmra.mrb[18].mxu0 %vm502_vm2, %v1326_v58 }
 0x1f6   : > { %v1328_v59 = vpop.eup %1327 }
 0x1f7   : > { %v1330_v60 = vpop.eup %1329  ;;  %1206 = vmatprep.mubr.msk.f32.mxu0 %vm502_vm2, %v1328_v59 }
 0x1f8   : > { %1207 = vmatmul.mubr.msk.f32.gmra.mrb[20].mxu0 %vm502_vm2, %v1330_v60 }
 0x1fa   : > { %v1332_v61 = vpop.eup %1331 }
 0x1fb   : > { %v1334_v62 = vpop.eup %1333  ;;  %1209 = vmatprep.mubr.msk.f32.mxu0 %vm502_vm2, %v1332_v61 }
 0x1fc   : > { %1210 = vmatmul.mubr.msk.f32.gmra.mrb[22].mxu0 %vm502_vm2, %v1334_v62 }
 0x2b3   : > { %v1190_v63 = vpop.f32.mrb[8].mxu0 }
 0x2b4   : > { %910 = vst [vmem:[%s1627_s29 + $0x8] sm:$0xff] %v1190_v63  ;;  %v830_v0 = vpop.f32.mrb[9].mxu0 }
 0x2b5   : > { %909 = vst [vmem:[%s1627_s29] sm:$0xff] %v830_v0 }
 0x2b7   : > { %v1193_v1 = vpop.f32.mrb[10].mxu0 }
 0x2b8   : > { %912 = vst [vmem:[%s1627_s29 + $0x18] sm:$0xff] %v1193_v1  ;;  %v840_v2 = vpop.f32.mrb[11].mxu0 }
 0x2b9   : > { %911 = vst [vmem:[%s1627_s29 + $0x10] sm:$0xff] %v840_v2 }
 0x2bb   : > { %v1196_v3 = vpop.f32.mrb[12].mxu0 }
 0x2bc   : > { %914 = vst [vmem:[%s1627_s29 + $0x28] sm:$0xff] %v1196_v3  ;;  %v850_v4 = vpop.f32.mrb[13].mxu0 }
 0x2bd   : > { %913 = vst [vmem:[%s1627_s29 + $0x20] sm:$0xff] %v850_v4 }
 0x2bf   : > { %v1199_v5 = vpop.f32.mrb[14].mxu0 }
 0x2c0   : > { %916 = vst [vmem:[%s1627_s29 + $0x38] sm:$0xff] %v1199_v5  ;;  %v860_v6 = vpop.f32.mrb[15].mxu0 }
 0x2c1   : > { %915 = vst [vmem:[%s1627_s29 + $0x30] sm:$0xff] %v860_v6 }
 0x2c3   : > { %v1202_v7 = vpop.f32.mrb[16].mxu0 }
 0x2c4   : > { %918 = vst [vmem:[%s1627_s29 + $0x48] sm:$0xff] %v1202_v7  ;;  %v870_v8 = vpop.f32.mrb[17].mxu0 }
 0x2c5   : > { %917 = vst [vmem:[%s1627_s29 + $0x40] sm:$0xff] %v870_v8 }
 0x2c7   : > { %v1205_v9 = vpop.f32.mrb[18].mxu0 }
 0x2c8   : > { %920 = vst [vmem:[%s1627_s29 + $0x58] sm:$0xff] %v1205_v9  ;;  %v880_v10 = vpop.f32.mrb[19].mxu0 }
 0x2c9   : > { %919 = vst [vmem:[%s1627_s29 + $0x50] sm:$0xff] %v880_v10 }
 0x2cb   : > { %v1208_v11 = vpop.f32.mrb[20].mxu0 }
 0x2cc   : > { %922 = vst [vmem:[%s1627_s29 + $0x68] sm:$0xff] %v1208_v11  ;;  %v890_v12 = vpop.f32.mrb[21].mxu0 }
 0x2cd   : > { %921 = vst [vmem:[%s1627_s29 + $0x60] sm:$0xff] %v890_v12 }
 0x2cf   : > { %v1211_v13 = vpop.f32.mrb[22].mxu0 }
 0x2d0   : > { %924 = vst [vmem:[%s1627_s29 + $0x78] sm:$0xff] %v1211_v13  ;;  %v900_v14 = vpop.f32.mrb[23].mxu0 }
 0x2d1   : > { %923 = vst [vmem:[%s1627_s29 + $0x70] sm:$0xff] %v900_v14 }
 0x2d2   : > { %1348 = shalt.err (!%p1345_p3)
}
 0x2d3   : > { %s1349_s18 = scalar_lea.hbm %s1648_s13, 2048  ;;  %s1353_s26 = scalar_lea.hbm %s1703_s6, 4096 }
 0x2d4   : > { %p1350_p4 = scmp.ne.s32.totalorder %s1648_s13, %s1349_s18  ;;  %p1354_p9 = scmp.lt.u32.totalorder %s1648_s13, %s1703_s6 }
 0x2d5   : > { %p1355_p10 = scmp.lt.u32.totalorder %s1353_s26, %s1349_s18  ;;  %p1357_p12 = scmp.lt.u32.totalorder %s1349_s18, %s1648_s13 }
 0x2d6   : > { %p1351_p7 = pnand %p1350_p4, %p1475_p5 }
 0x2d7   : > { %p1356_p11 = por %p1355_p10, %p1354_p9 }
 0x2d8   : > { %p1352_p8 = pneg %p1351_p7 }
 0x2d9   : > { %p1358_p13 = por %p1357_p12, %p1356_p11 }
 0x2db   : > { %p1359_p0 = pnand %p1358_p13, %p1352_p8 }
 0x2dd   : > { %1362 = shalt.err (!%p1359_p0)
}
 0x2de   : > { %s1400_s9 = smov 128   ;;  %s1401_s11 = smov 8  }
 0x2df   : > { %1230 = dma.vmem_to_hbm [thread:$0]  (%p1475_p5), %s1650_s10, 2048, %s1648_s13, %s1656_s25, %s1400_s9, %s1400_s9, %s1401_s11  }
 0x2e0 PF: > { %p1236_p1 = scmp.ge.s32.totalorder %s1397_s24, 2  ;;  %s954_s12 = sand.u32 1, %s1385_s21  }
 0x2e1   : > { %s955_s14 = scalar_lea.sflag [#allocation3], %s954_s12 }
 0x2e2   : > { %p1233_p2 = pnand %p1236_p1, %p1479_p6 }
 0x2e4   : > { %1380 = dma.done.wait (!%p1233_p2), %s955_s14, 2048  }
 0x2e5   : > { %1382 = vsyncadd (!%p1233_p2), %s955_s14, 4294965248  ;;  %p16_p3 = scmp.ge.s32.totalorder %s1462_s27, 4   ;;  %s1706_s21 = smov %s1389_s22 }
 0x2e6   : > { %s1707_s22 = smov %s1393_s23  ;;  %s1708_s23 = smov %s1473_s30 }
 0x2e7   : > { %s1709_s24 = smov %s1462_s27  ;;  %18 = sbr.rel (!%p16_p3) target bundleno = 3 (0x3), region = 79 }
 0x2ee   :  { %960 = vsyncpa [#allocation3], 1 }
 0x2ef   :  { %962 = vsyncpa [#allocation3 + $0x1], 1 }

</bundles_post_ra>
